<compile_context>
chip_gen: v7x
topology: tpu7x:2x2x1
jax: 0.10.0
libtpu: 0.0.40
codegen_flags: <defaults>
</compile_context>

<pallas_src>
import functools
import math

import jax
import jax.numpy as jnp
from jax.experimental import pallas as pl
from jax.experimental.pallas import tpu as pltpu


def _round_up(n, m):
    return ((n + m - 1) // m) * m


def _rnn_seq_kernel(x_ref, h0_ref, wx_ref, wh_ref, b_ref, out_ref, h_scr):
    """One time step per grid iteration.

    out[t] = [x_t | h_{t-1}] @ [Wx ; Wh] + b     (split-K, no in-kernel concat)
    h_t    = out[t][:, :H]                       (carried in VMEM scratch)
    Fused output columns: [new_hidden | output | zero padding].
    """
    @pl.when(pl.program_id(0) == 0)
    def _():
        h_scr[...] = h0_ref[...]

    acc = jnp.dot(x_ref[0], wx_ref[...], preferred_element_type=jnp.float32)
    acc = acc + jnp.dot(h_scr[...], wh_ref[...], preferred_element_type=jnp.float32)
    acc = acc + b_ref[...]              # bias pre-broadcast: single vreg add
    out_ref[0] = acc
    h_scr[...] = acc[:, : h_scr.shape[1]]


def prepare_fused_params(w_h, b_h, w_o, b_o, input_size, batch):
    """Fuse the two nn.Linear layers into one lane-padded weight set.

    w_h: (I+H, H), w_o: (I+H, O)   (stored as in_features x out_features)
    b_h: (1, H),   b_o: (1, O)

    Returns:
      w_x     : (I, Np)       rows of the fused weight multiplying x
      w_hid   : (H, Np)       rows of the fused weight multiplying hidden
      b_bcast : (Bp, Np)      fused bias, pre-broadcast over the padded batch
    with Np = round_up(H + O, 128), Bp = round_up(batch, 8).  Padded columns are
    zero so they never leak into the real outputs.
    """
    H = w_h.shape[1]
    O = w_o.shape[1]
    n = H + O
    n_pad = _round_up(max(n, 128), 128)
    b_pad = _round_up(max(batch, 8), 8)

    w_comb = jnp.concatenate([w_h, w_o], axis=1)          # (I+H, H+O)
    b_comb = jnp.concatenate([b_h, b_o], axis=1)          # (1, H+O)
    w_comb = jnp.pad(w_comb, ((0, 0), (0, n_pad - n)))
    b_comb = jnp.pad(b_comb, ((0, 0), (0, n_pad - n)))

    w_x = w_comb[:input_size]                             # (I, Np)
    w_hid = w_comb[input_size:]                           # (H, Np)
    b_bcast = jnp.tile(b_comb, (b_pad, 1))                # (Bp, Np), materialized once
    return w_x, w_hid, b_bcast


@functools.partial(jax.jit, static_argnames=("hidden_size", "output_size"))
def rnn_forward_sequence(xs, hidden0, w_x, w_hid, b_bcast, *,
                         hidden_size, output_size):
    """Run the RNN cell over a whole sequence in ONE pallas_call.

    xs: (T, B, I), hidden0: (B, H); fused params from prepare_fused_params.
    Returns (outputs (T, B, O), final hidden (B, H)).
    """
    T, B, I = xs.shape
    H = hidden_size
    n_pad = w_x.shape[1]
    b_pad = b_bcast.shape[0]

    # Pad the batch ONCE for the whole sequence; padded rows are sliced off
    # once at the end (they hold bias values, which never leak).
    xs_p = jnp.pad(xs.astype(jnp.float32), ((0, 0), (0, b_pad - B), (0, 0)))
    h0_p = jnp.pad(hidden0.astype(jnp.float32), ((0, b_pad - B), (0, 0)))

    fused = pl.pallas_call(
        _rnn_seq_kernel,
        out_shape=jax.ShapeDtypeStruct((T, b_pad, n_pad), jnp.float32),
        grid=(T,),
        in_specs=[
            pl.BlockSpec((1, b_pad, I), lambda t: (t, 0, 0)),    # stream x_t
            pl.BlockSpec((b_pad, H), lambda t: (0, 0)),          # h0   (resident)
            pl.BlockSpec((I, n_pad), lambda t: (0, 0)),          # Wx   (resident)
            pl.BlockSpec((H, n_pad), lambda t: (0, 0)),          # Wh   (resident)
            pl.BlockSpec((b_pad, n_pad), lambda t: (0, 0)),      # bias (resident)
        ],
        out_specs=pl.BlockSpec((1, b_pad, n_pad), lambda t: (t, 0, 0)),
        scratch_shapes=[pltpu.VMEM((b_pad, H), jnp.float32)],    # carried hidden
        compiler_params=pltpu.CompilerParams(
            dimension_semantics=("arbitrary",)),                 # sequential carry
    )(xs_p, h0_p, w_x, w_hid, b_bcast)

    # Single slice for the whole sequence (no per-step pad/slice HLOs).
    outputs = fused[:, :B, hidden_size:hidden_size + output_size]
    final_hidden = fused[T - 1, :B, :hidden_size]
    return outputs, final_hidden


def rnn_forward(x, hidden, w_x, w_hid, b_bcast, *, hidden_size, output_size):
    """Module-equivalent single step: (output (B, O), hidden' (B, H))."""
    outputs, new_hidden = rnn_forward_sequence(
        x[None], hidden, w_x, w_hid, b_bcast,
        hidden_size=hidden_size, output_size=output_size)
    return outputs[0], new_hidden


def init_linear_params(key, in_features, out_features):
    """nn.Linear default init U(-1/sqrt(fan_in), 1/sqrt(fan_in)); weight already
    transposed to (in_features, out_features)."""
    kw, kb = jax.random.split(key)
    bound = 1.0 / math.sqrt(in_features)
    w = jax.random.uniform(kw, (in_features, out_features),
                           minval=-bound, maxval=bound, dtype=jnp.float32)
    b = jax.random.uniform(kb, (1, out_features),
                           minval=-bound, maxval=bound, dtype=jnp.float32)
    return w, b


if __name__ == "__main__":
    batch = 2
    input_size = 16
    hidden_size = 32
    output_size = 8
    seq_len = 8

    key = jax.random.PRNGKey(0)
    k_x, k_h, k_lin1, k_lin2 = jax.random.split(key, 4)

    xs = jax.random.normal(k_x, (seq_len, batch, input_size), dtype=jnp.float32)
    # init_hidden() would be zeros; random here exercises the carried-hidden path.
    hidden0 = jax.random.normal(k_h, (batch, hidden_size), dtype=jnp.float32)

    w_h, b_h = init_linear_params(k_lin1, input_size + hidden_size, hidden_size)
    w_o, b_o = init_linear_params(k_lin2, input_size + hidden_size, output_size)

    w_x, w_hid, b_bcast = prepare_fused_params(w_h, b_h, w_o, b_o,
                                               input_size, batch)

    # --- fused sequence run (one pallas_call for all T steps) ---
    outputs, final_hidden = rnn_forward_sequence(
        xs, hidden0, w_x, w_hid, b_bcast,
        hidden_size=hidden_size, output_size=output_size)
    jax.block_until_ready((outputs, final_hidden))

    # Pure-JAX reference: explicit per-step loop with concat (module semantics).
    h = hidden0
    ref_outs = []
    for t in range(seq_len):
        combined = jnp.concatenate([xs[t], h], axis=1)
        ref_outs.append(combined @ w_o + b_o)
        h = combined @ w_h + b_h
    ref_outs = jnp.stack(ref_outs)

    assert outputs.shape == (seq_len, batch, output_size)
    assert final_hidden.shape == (batch, hidden_size)
    assert jnp.allclose(outputs, ref_outs, atol=1e-5), "sequence output mismatch"
    assert jnp.allclose(final_hidden, h, atol=1e-5), "final hidden mismatch"

    # --- single-step run (exactly the module's forward(input, hidden)) ---
    out1, hid1 = rnn_forward(xs[0], hidden0, w_x, w_hid, b_bcast,
                             hidden_size=hidden_size, output_size=output_size)
    jax.block_until_ready((out1, hid1))
    combined0 = jnp.concatenate([xs[0], hidden0], axis=1)
    assert jnp.allclose(out1, combined0 @ w_o + b_o, atol=1e-5), "step output mismatch"
    assert jnp.allclose(hid1, combined0 @ w_h + b_h, atol=1e-5), "step hidden mismatch"

    print("KERNEL_OK")
</pallas_src>

<mosaic_0001>
module attributes {stable_mosaic.version = 11 : i64} {
  func.func @_rnn_seq_kernel(%arg0: i32, %arg1: memref<1x8x16xf32, #tpu.memory_space<vmem>>, %arg2: memref<8x32xf32, #tpu.memory_space<vmem>>, %arg3: memref<16x128xf32, #tpu.memory_space<vmem>>, %arg4: memref<32x128xf32, #tpu.memory_space<vmem>>, %arg5: memref<8x128xf32, #tpu.memory_space<vmem>>, %arg6: memref<1x8x128xf32, #tpu.memory_space<vmem>>, %arg7: memref<8x32xf32, #tpu.memory_space<vmem>>) attributes {dimension_semantics = [#tpu.dimension_semantics<arbitrary>], iteration_bounds = array<i64: 8>, scalar_prefetch = 0 : i64, scratch_operands = 1 : i64, tpu.core_type = #tpu.core_type<tc>, window_params = [{transform_indices = @transform_0, window_bounds = array<i64: 1, 8, 16>}, {pipeline_mode = #tpu.pipeline_mode<synchronous>, transform_indices = @transform_1, window_bounds = array<i64: 8, 32>}, {pipeline_mode = #tpu.pipeline_mode<synchronous>, transform_indices = @transform_2, window_bounds = array<i64: 16, 128>}, {pipeline_mode = #tpu.pipeline_mode<synchronous>, transform_indices = @transform_3, window_bounds = array<i64: 32, 128>}, {pipeline_mode = #tpu.pipeline_mode<synchronous>, transform_indices = @transform_4, window_bounds = array<i64: 8, 128>}, {transform_indices = @transform_5, window_bounds = array<i64: 1, 8, 128>}]} {
    %c0_i32 = arith.constant 0 : i32
    %0 = arith.cmpi eq, %arg0, %c0_i32 : i32
    %1 = arith.extui %0 : i1 to i32
    %c0_i32_0 = arith.constant 0 : i32
    %2 = arith.cmpi ne, %1, %c0_i32_0 : i32
    scf.if %2 {
      %c0_17 = arith.constant 0 : index
      %c0_18 = arith.constant 0 : index
      %18 = vector.load %arg2[%c0_17, %c0_18] : memref<8x32xf32, #tpu.memory_space<vmem>>, vector<8x32xf32>
      %c0_19 = arith.constant 0 : index
      %c0_20 = arith.constant 0 : index
      %19 = vector.load %arg7[%c0_19, %c0_20] : memref<8x32xf32, #tpu.memory_space<vmem>>, vector<8x32xf32>
      tpu.vector_store %arg7[%c0_19, %c0_20], %18 {strides = array<i32>} : memref<8x32xf32, #tpu.memory_space<vmem>>, vector<8x32xf32>,
    } else {
    }
    %c0 = arith.constant 0 : index
    %c0_1 = arith.constant 0 : index
    %c0_2 = arith.constant 0 : index
    %3 = vector.load %arg1[%c0, %c0_1, %c0_2] : memref<1x8x16xf32, #tpu.memory_space<vmem>>, vector<1x8x16xf32>
    %4 = vector.shape_cast %3 : vector<1x8x16xf32> to vector<8x16xf32>
    %c0_3 = arith.constant 0 : index
    %c0_4 = arith.constant 0 : index
    %5 = vector.load %arg3[%c0_3, %c0_4] : memref<16x128xf32, #tpu.memory_space<vmem>>, vector<16x128xf32>
    %cst = arith.constant dense<0.000000e+00> : vector<8x128xf32>
    %6 = tpu.matmul %4, %5, %cst {dimension_numbers = #tpu.dot_dimension_numbers<[1], [0], [0], [1], [0, 0, 1, 1], [], []>} : vector<8x16xf32>, vector<16x128xf32>, vector<8x128xf32> -> vector<8x128xf32>
    %c0_5 = arith.constant 0 : index
    %c0_6 = arith.constant 0 : index
    %7 = vector.load %arg7[%c0_5, %c0_6] : memref<8x32xf32, #tpu.memory_space<vmem>>, vector<8x32xf32>
    %c0_7 = arith.constant 0 : index
    %c0_8 = arith.constant 0 : index
    %8 = vector.load %arg4[%c0_7, %c0_8] : memref<32x128xf32, #tpu.memory_space<vmem>>, vector<32x128xf32>
    %cst_9 = arith.constant dense<0.000000e+00> : vector<8x128xf32>
    %9 = tpu.matmul %7, %8, %cst_9 {dimension_numbers = #tpu.dot_dimension_numbers<[1], [0], [0], [1], [0, 0, 1, 1], [], []>} : vector<8x32xf32>, vector<32x128xf32>, vector<8x128xf32> -> vector<8x128xf32>
    %10 = arith.addf %6, %9 : vector<8x128xf32>
    %c0_10 = arith.constant 0 : index
    %c0_11 = arith.constant 0 : index
    %11 = vector.load %arg5[%c0_10, %c0_11] : memref<8x128xf32, #tpu.memory_space<vmem>>, vector<8x128xf32>
    %12 = arith.addf %10, %11 : vector<8x128xf32>
    %c0_12 = arith.constant 0 : index
    %c0_13 = arith.constant 0 : index
    %c0_14 = arith.constant 0 : index
    %13 = vector.load %arg6[%c0_12, %c0_13, %c0_14] : memref<1x8x128xf32, #tpu.memory_space<vmem>>, vector<1x8x128xf32>
    %14 = vector.shape_cast %13 : vector<1x8x128xf32> to vector<8x128xf32>
    %15 = vector.shape_cast %12 : vector<8x128xf32> to vector<1x8x128xf32>
    tpu.vector_store %arg6[%c0_12, %c0_13, %c0_14], %15 {strides = array<i32>} : memref<1x8x128xf32, #tpu.memory_space<vmem>>, vector<1x8x128xf32>,
    %16 = vector.extract_strided_slice %12 {offsets = [0, 0], sizes = [8, 32], strides = [1, 1]} : vector<8x128xf32> to vector<8x32xf32>
    %c0_15 = arith.constant 0 : index
    %c0_16 = arith.constant 0 : index
    %17 = vector.load %arg7[%c0_15, %c0_16] : memref<8x32xf32, #tpu.memory_space<vmem>>, vector<8x32xf32>
    tpu.vector_store %arg7[%c0_15, %c0_16], %16 {strides = array<i32>} : memref<8x32xf32, #tpu.memory_space<vmem>>, vector<8x32xf32>,
    return
  }
  func.func @transform_0(%arg0: i32) -> (i32, i32, i32) {
    %c0_i32 = arith.constant 0 : i32
    %c0_i32_0 = arith.constant 0 : i32
    %c0_i32_1 = arith.constant 0 : i32
    return %arg0, %c0_i32, %c0_i32_0 : i32, i32, i32
  }
  func.func @transform_1(%arg0: i32) -> (i32, i32) {
    %c0_i32 = arith.constant 0 : i32
    %c0_i32_0 = arith.constant 0 : i32
    %c0_i32_1 = arith.constant 0 : i32
    return %c0_i32, %c0_i32_0 : i32, i32
  }
  func.func @transform_2(%arg0: i32) -> (i32, i32) {
    %c0_i32 = arith.constant 0 : i32
    %c0_i32_0 = arith.constant 0 : i32
    %c0_i32_1 = arith.constant 0 : i32
    return %c0_i32, %c0_i32_0 : i32, i32
  }
  func.func @transform_3(%arg0: i32) -> (i32, i32) {
    %c0_i32 = arith.constant 0 : i32
    %c0_i32_0 = arith.constant 0 : i32
    %c0_i32_1 = arith.constant 0 : i32
    return %c0_i32, %c0_i32_0 : i32, i32
  }
  func.func @transform_4(%arg0: i32) -> (i32, i32) {
    %c0_i32 = arith.constant 0 : i32
    %c0_i32_0 = arith.constant 0 : i32
    %c0_i32_1 = arith.constant 0 : i32
    return %c0_i32, %c0_i32_0 : i32, i32
  }
  func.func @transform_5(%arg0: i32) -> (i32, i32, i32) {
    %c0_i32 = arith.constant 0 : i32
    %c0_i32_0 = arith.constant 0 : i32
    %c0_i32_1 = arith.constant 0 : i32
    return %arg0, %c0_i32, %c0_i32_0 : i32, i32, i32
  }
}

</mosaic_0001>

<bundles_post_ra>
// kernel: rnn_forward_sequence.1
= control target key start
LH: loop header
LB: loop body
LE: loop exit
PB: predicated region body
PF: predicated region fallthrough
CT: control target
= control target key end

     0   :  { %s539_s18 = smov 0   ;;  %s583_s0 = inlined_call_operand.vmem [shape: f32[8,8,16], index: 0, kind: input, shape index: {}]   ;;  %s584_s1 = inlined_call_operand.vmem [shape: f32[8,32], index: 1, kind: input, shape index: {}]   ;;  %s585_s2 = inlined_call_operand.vmem [shape: f32[16,128], index: 2, kind: input, shape index: {}]   ;;  %s586_s3 = inlined_call_operand.vmem [shape: f32[32,128], index: 3, kind: input, shape index: {}]   ;;  %s587_s4 = inlined_call_operand.vmem [shape: f32[8,128], index: 4, kind: input, shape index: {}]   ;;  %s588_s5 = inlined_call_operand.vmem [shape: f32[8,8,128], index: 5, kind: output, shape index: {}]  }
   0x1 LB: > { %s440_s19 = sadd.s32 4294967295, %s504_s18   ;;  %p444_p0 = scmp.ge.s32.totalorder %s504_s18, 1  ;;  %s504_s18 = sphi %s539_s18, %s15_s18  }
   0x2   : > { %p186_p1 = scmp.lt.s32.totalorder %s504_s18, 9 }
   0x4   : > { %p187_p2 = pnand %p444_p0, %p186_p1 }
   0x5   : > { %p212_p3 = scmp.lt.s32.totalorder (!%p187_p2), %s440_s19, 7  ;;  %p447_p4 = scmp.ne.s32.totalorder (!%p187_p2), %s440_s19, 0 }
   0x6   : > { %190 = sbr.rel (%p187_p2) target bundleno = 248 (0xf8), region = 40 }
   0xd   : > { %s213_s20 = scalar_select %p212_p3, %s440_s19, 7 }
   0xe   : > { %223 = sbr.rel (%p447_p4) target bundleno = 21 (0x15), region = 44  ;;  %v224_v0 = vld [vmem:[%s584_s1] sm:$0xff] (!%p447_p4)  ;;  %vm225_vm0 = vcmask (!%p447_p4), 261120  }
   0xf   : > { %s445_s21 = sshll.u32 %s213_s20, 3  ;;  %226 = vst.msk [vmem:[#allocation2] sm:$0xff] (!%p447_p4), %vm225_vm0, %v224_v0 }
  0x10   : > { %s215_s24 = scalar_lea.vmem %s583_s0, %s445_s21  ;;  %s553_s27 = scalar_lea.vmem %s588_s5, %s445_s21 }
  0x15 PF: > { %v231_v1 = vld [vmem:[%s586_s3] sm:$0xff]  ;;  %v232_v2 = vld [vmem:[%s586_s3 + $0x8] sm:$0xff]  ;;  %v506_v4 = vmov 0.0|0.0   ;;  %v233_v7 = vld [vmem:[%s586_s3 + $0x10] sm:$0xff]  ;;  %vm507_vm1 = vmmov 0   ;;  %v508_v10 = vmov 0.0  }
  0x16   : > { %v228_v3 = vld [vmem:[%s585_s2] sm:$0xff]  ;;  %478 = vmatprep.subr.bf16.mxu0 %v506_v4  ;;  %v479_v5 = vpack.c.bf16 %v232_v2, %v231_v1  ;;  %484 = vmatprep.subr.bf16.mxu1 %v506_v4  ;;  %v229_v6 = vld [vmem:[%s585_s2 + $0x8] sm:$0xff]  ;;  %v234_v8 = vld [vmem:[%s586_s3 + $0x18] sm:$0xff]  ;;  %vm309_vm2 = vcmask 130048   ;;  %vm235_vm3 = vcmask 261120  }
  0x17   : > { %v485_v9 = vpack.c.bf16 %v229_v6, %v228_v3  ;;  %475 = vmatprep.mubr.msk.f32.mxu1 %vm507_vm1, %v508_v10  ;;  %468 = vmatprep.mubr.msk.f32.mxu0 %vm507_vm1, %v508_v10  ;;  %v482_v11 = vpack.c.bf16 %v234_v8, %v233_v7  ;;  %v227_v12 = vld [vmem:[%s215_s24] sm:$0xff] }
  0x18   : > { %480 = vmatpush3.bf16.msra.mxu0 %v479_v5  ;;  %v230_v13 = vld [vmem:[#allocation2] sm:$0xff] }
  0x19   : > { %481 = vmatprep.subr.bf16.mxu0 %v506_v4  ;;  %486 = vmatpush3.bf16.msra.mxu1 %v485_v9  ;;  %v383_v17 = vld [vmem:[%s587_s4] sm:$0xff] }
  0x1c   : > { %483 = vmatpush3.bf16.msra.mxu0 %v482_v11  ;;  %476 = vmatmul.mubr.msk.f32.vlgmr.msra.gmra.mrb[0].mxu1 %vm309_vm2, %v227_v12 }
  0x1f   : > { %469 = vmatmul.mubr.msk.f32.vlgmr.msra.gmra.mrb[0].mxu0 %vm235_vm3, %v230_v13 }
  0xef   : > { %v379_v14 = vpop.f32.mrb[0].mxu1 }
  0xf0   : > { %v477_v15 = vpop.f32.mrb[1].mxu1 }
  0xf2   : > { %v305_v16 = vpop.f32.mrb[0].mxu0 }
  0xf3   : > { %v380_v18 = vadd.f32 %v379_v14, %v305_v16  ;;  %v470_v19 = vpop.f32.mrb[1].mxu0 }
  0xf5   : > { %v384_v20 = vadd.f32 %v383_v17, %v380_v18 }
  0xf7   : > { %385 = vst [vmem:[%s553_s27] sm:$0xff] %v384_v20  ;;  %386 = vst.msk [vmem:[#allocation2] sm:$0xff] %vm235_vm3, %v384_v20 }
  0xf8 PF: > { %s15_s18 = sadd.s32 1, %s504_s18  }
  0xf9   : > { %p12_p5 = scmp.ge.s32.totalorder %s15_s18, 10  }
  0xfb   :  { %14 = sbr.rel (!%p12_p5) target bundleno = 1 (0x1), region = 74 }

</bundles_post_ra>
